<compile_context>
chip_gen: v5e
topology: v5e:2x2
jax: 0.10.0
libtpu: 0.0.40
codegen_flags: <defaults>
</compile_context>

<pallas_src>
import functools

import jax
import jax.numpy as jnp
import numpy as np
from jax.experimental import pallas as pl
from jax.experimental.pallas import tpu as pltpu


_NO_EDGE = -1e30            # sentinel stored (bf16) in the fused mask/edge-attr slab
_EDGE_VALID_THRESH = -1e29  # slab > thresh  <=>  a real edge
_MASKED_SCORE = -1e30       # finite masked-score value (avoids inf-inf NaNs)
_ROW_VALID_THRESH = -1e29   # row max above this <=> target has >=1 incoming edge


# ---------------------------------------------------------------------------
# Kernels
# ---------------------------------------------------------------------------
def unimp_full_kernel(x_ref, slab_ref, wbig_ref, bbig_ref, o_ref, *, dp, d):
    """All-target-rows variant (aggregate=True path).

    x_ref    : (G, Ep, C)   bf16 padded node features, G graphs per grid step
    slab_ref : (G, Ep, Ep)  bf16 fused mask/edge-attr (rows=target i, cols=source j)
    wbig_ref : (C, 4*Dp)    bf16 packed [w1 | w2 | w3/sqrt(D)(+b5,w5 cols) | w4(+ones col)]
    bbig_ref : (1, 4*Dp)    f32 packed biases
    o_ref    : (G, Ep, Dp)  f32 lane-dense per-node output
    """
    G, Ep, C = x_ref.shape
    f32 = jnp.float32

    # One bf16 MXU launch for every node transform (f32 accumulation).
    x = x_ref[...].reshape(G * Ep, C)
    y = jnp.dot(x, wbig_ref[...], preferred_element_type=f32) + bbig_ref[...]
    x1 = y[:, 0 * dp:1 * dp].reshape(G, Ep, dp)                        # skip path (f32)
    x2 = y[:, 1 * dp:2 * dp].astype(jnp.bfloat16).reshape(G, Ep, dp)   # message value
    x3 = y[:, 2 * dp:3 * dp].astype(jnp.bfloat16).reshape(G, Ep, dp)   # query (pre-scaled)
    x4 = y[:, 3 * dp:4 * dp].astype(jnp.bfloat16).reshape(G, Ep, dp)   # key (+ ones col)
    pw = y[:, 2 * dp + d + 1:2 * dp + d + 2].reshape(G, Ep, 1)         # edge-attr projection

    # scores[g, i, j] = <q_i, k_j> + pb_i (pb folded in via the ones key column).
    s = jnp.einsum("gik,gjk->gij", x3, x4, preferred_element_type=f32)
    slab = slab_ref[...].astype(f32)                                   # (G, Ep, Ep)
    valid = slab > _EDGE_VALID_THRESH
    ea = jnp.where(valid, slab, 0.0)          # never multiply the sentinel
    s = jnp.where(valid, s + pw * ea, _MASKED_SCORE)

    # Row softmax over source nodes j (per target node i).
    m = jnp.max(s, axis=-1, keepdims=True)
    p = jnp.exp(s - m)
    denom = jnp.sum(p, axis=-1, keepdims=True)
    alpha = (p * pl.reciprocal(denom, approx=True)).astype(jnp.bfloat16)
    row_valid = (m > _ROW_VALID_THRESH).astype(f32)   # no-in-edge / padded rows -> 0

    aggr = jnp.einsum("gij,gjd->gid", alpha, x2, preferred_element_type=f32)
    o_ref[...] = x1 + aggr * row_valid


def unimp_diag_kernel(x_ref, xd_ref, slab_ref, wsrc_ref, bsrc_ref,
                      wtgt_ref, btgt_ref, o_ref, *, dp, d):
    """Diagonal-target-only variant (aggregate=False path).

    x_ref    : (G, Ep, C)  bf16 all (source) node features of each graph
    xd_ref   : (G, 1, C)   bf16 diagonal (target) node feature of each graph
    slab_ref : (G, 1, Ep)  bf16 fused mask/edge-attr row for the diagonal target
    wsrc_ref : (C, 2*Dp)   bf16 packed [w2 | w4(+ones col)]
    bsrc_ref : (1, 2*Dp)   f32
    wtgt_ref : (C, 2*Dp)   bf16 packed [w1 | w3/sqrt(D)(+b5,w5 cols)]
    btgt_ref : (1, 2*Dp)   f32
    o_ref    : (G, 1, Dp)  f32
    """
    G, Ep, C = x_ref.shape
    f32 = jnp.float32

    # Source-side transforms (value + key) for every node: one bf16 MXU matmul.
    x = x_ref[...].reshape(G * Ep, C)
    ys = jnp.dot(x, wsrc_ref[...], preferred_element_type=f32) + bsrc_ref[...]
    x2 = ys[:, 0 * dp:1 * dp].reshape(G, Ep, dp)                       # value
    x4 = ys[:, 1 * dp:2 * dp].reshape(G, Ep, dp)                       # key (+ ones col)

    # Target-side transforms (skip + query) only for the diagonal node.
    xd = xd_ref[:, 0, :]                                               # (G, C) bf16
    yt = jnp.dot(xd, wtgt_ref[...], preferred_element_type=f32) + btgt_ref[...]
    x1d = yt[:, 0 * dp:1 * dp]                                         # (G, Dp) skip path
    x3d = yt[:, 1 * dp:2 * dp]                                         # (G, Dp) query
    pwd = yt[:, 1 * dp + d + 1:1 * dp + d + 2]                         # (G, 1) edge-attr proj

    # Score row over source nodes: VPU multiply + lane reduce (no (Ep,Ep) tile).
    s = jnp.sum(x3d[:, None, :] * x4, axis=-1)                         # (G, Ep)
    slab = slab_ref[:, 0, :].astype(f32)                               # (G, Ep)
    valid = slab > _EDGE_VALID_THRESH
    ea = jnp.where(valid, slab, 0.0)
    s = jnp.where(valid, s + pwd * ea, _MASKED_SCORE)

    m = jnp.max(s, axis=-1, keepdims=True)                             # (G, 1)
    p = jnp.exp(s - m)
    denom = jnp.sum(p, axis=-1, keepdims=True)
    alpha = p * pl.reciprocal(denom, approx=True)
    row_valid = (m > _ROW_VALID_THRESH).astype(f32)

    aggr = jnp.sum(alpha[:, :, None] * x2, axis=1)                     # (G, Dp)
    o_ref[:, 0, :] = x1d + aggr * row_valid


# ---------------------------------------------------------------------------
# Weight packing: fuse w1..w5 (+ biases, + 1/sqrt(D)) into one lane-dense matmul.
# ---------------------------------------------------------------------------
def _pack_weights(params, D, Dp):
    """Slot layout (each slot Dp lanes, 128-aligned):
       0: w1 (skip)   1: w2 (value)
       2: w3/sqrt(D)  (query; col D = <., b5> proj, col D+1 = <., w5> proj)
       3: w4          (key;   col D = all-ones bias column -> adds pb_i to scores)
    """
    scale = 1.0 / float(np.sqrt(np.float32(D)))

    def pad_w(wt):                        # (C, D) -> (C, Dp)
        return jnp.pad(wt, ((0, 0), (0, Dp - wt.shape[1])))

    def pad_b(b):                         # (D,) -> (Dp,)
        return jnp.pad(b, (0, Dp - b.shape[0]))

    w1t, w2t, w4t = params["w1"].T, params["w2"].T, params["w4"].T
    w3t = scale * params["w3"].T          # fold 1/sqrt(D) into the query slot
    b3 = scale * params["b3"]
    w5c = params["w5"][:, 0]              # (D,)
    b5 = params["b5"]                     # (D,)

    w3slot = pad_w(w3t).at[:, D].set(w3t @ b5).at[:, D + 1].set(w3t @ w5c)
    b3slot = pad_b(b3).at[D].set(jnp.dot(b3, b5)).at[D + 1].set(jnp.dot(b3, w5c))
    w4slot = pad_w(w4t)
    b4slot = pad_b(params["b4"]).at[D].set(1.0)

    wbig = jnp.concatenate([pad_w(w1t), pad_w(w2t), w3slot, w4slot], axis=1)
    bbig = jnp.concatenate(
        [pad_b(params["b1"]), pad_b(params["b2"]), b3slot, b4slot]).reshape(1, 4 * Dp)
    return wbig.astype(jnp.bfloat16), bbig.astype(jnp.float32)


# ---------------------------------------------------------------------------
# VMEM budgeting / graph-batch selection.
# ---------------------------------------------------------------------------
def _vmem_limit_bytes():
    cap = 64 * 1024 * 1024
    try:
        cap = int(pltpu.get_tpu_info().vmem_capacity_bytes)
    except Exception:
        pass
    # ~48 MiB on v7x (64 MiB physical), ~96 MiB on v5e/v6e (128 MiB physical).
    return int(min(cap * 3 // 4, 100 * 1024 * 1024))


def _pick_group(num_graphs, per_graph_bytes, budget, ep, max_rows=4096):
    """Largest divisor G of num_graphs whose G-batch fits the VMEM budget."""
    best = 1
    for cand in range(1, num_graphs + 1):
        if num_graphs % cand:
            continue
        if cand * per_graph_bytes <= budget and cand * ep <= max_rows:
            best = cand
    return best


# ---------------------------------------------------------------------------
# pallas_call wrappers.
# ---------------------------------------------------------------------------
def unimp_full_pallas(xg, slab, wbig, bbig, *, D):
    A, Ep, C = xg.shape
    Dp = wbig.shape[1] // 4
    vmem = _vmem_limit_bytes()
    per = 16 * Ep * Ep + Ep * (4 * C + 40 * Dp)        # rough resident bytes / graph
    G = _pick_group(A, per, vmem // 2, Ep)
    kernel = functools.partial(unimp_full_kernel, dp=Dp, d=D)
    # TODO(synk): for very large num_entities (Ep >~ 1k) tile the source axis with
    #             a flash-style online softmax instead of one (Ep, Ep) tile.
    return pl.pallas_call(
        kernel,
        out_shape=jax.ShapeDtypeStruct((A, Ep, Dp), jnp.float32),
        grid=(A // G,),
        in_specs=[
            pl.BlockSpec((G, Ep, C), lambda i: (i, 0, 0)),
            pl.BlockSpec((G, Ep, Ep), lambda i: (i, 0, 0)),
            pl.BlockSpec((C, 4 * Dp), lambda i: (0, 0)),
            pl.BlockSpec((1, 4 * Dp), lambda i: (0, 0)),
        ],
        out_specs=pl.BlockSpec((G, Ep, Dp), lambda i: (i, 0, 0)),
        compiler_params=pltpu.CompilerParams(
            dimension_semantics=("parallel",),
            vmem_limit_bytes=vmem,
        ),
    )(xg, slab, wbig, bbig)


def unimp_diag_pallas(xg, xd, slab_d, w_src, b_src, w_tgt, b_tgt, *, D):
    A, Ep, C = xg.shape
    Dp = w_src.shape[1] // 2
    vmem = _vmem_limit_bytes()
    per = Ep * (4 * C + 32 * Dp + 8) + 4096            # rough resident bytes / graph
    G = _pick_group(A, per, vmem // 2, Ep)
    kernel = functools.partial(unimp_diag_kernel, dp=Dp, d=D)
    return pl.pallas_call(
        kernel,
        out_shape=jax.ShapeDtypeStruct((A, 1, Dp), jnp.float32),
        grid=(A // G,),
        in_specs=[
            pl.BlockSpec((G, Ep, C), lambda i: (i, 0, 0)),
            pl.BlockSpec((G, 1, C), lambda i: (i, 0, 0)),
            pl.BlockSpec((G, 1, Ep), lambda i: (i, 0, 0)),
            pl.BlockSpec((C, 2 * Dp), lambda i: (0, 0)),
            pl.BlockSpec((1, 2 * Dp), lambda i: (0, 0)),
            pl.BlockSpec((C, 2 * Dp), lambda i: (0, 0)),
            pl.BlockSpec((1, 2 * Dp), lambda i: (0, 0)),
        ],
        out_specs=pl.BlockSpec((G, 1, Dp), lambda i: (i, 0, 0)),
        compiler_params=pltpu.CompilerParams(
            dimension_semantics=("parallel",),
            vmem_limit_bytes=vmem,
        ),
    )(xg, xd, slab_d, w_src, b_src, w_tgt, b_tgt)


# ---------------------------------------------------------------------------
# Glue: UniMPGNN forward.
# ---------------------------------------------------------------------------
def unimp_gnn_forward(x, edge_index, edge_attr, params, num_agents,
                      aggregate=False, batch=None):
    N, C = x.shape
    D = params["w1"].shape[0]
    num_entities = N // num_agents
    Ep = ((num_entities + 7) // 8) * 8                 # sublane-pad the node axis
    Dp = 128 * ((D + 2 + 127) // 128)                  # lane-pad features (+2 proj cols)

    # Per-graph local edge coordinates (block-diagonal batched graph).
    # TODO(synk): parallel (duplicate) edges collapse in the dense scatter; the
    #             edge-list reference treats them as separate softmax terms.
    # TODO(synk): edges crossing graphs are not representable per-graph (the
    #             module's batching never produces them).
    # TODO(synk): edge_attr must stay > -1e29 (the fused slab uses -1e30 as the
    #             "no edge" sentinel).
    src, tgt = edge_index[0], edge_index[1]
    g = tgt // num_entities
    ls = src % num_entities
    lt = tgt % num_entities
    ea = edge_attr[:, 0].astype(jnp.bfloat16)

    wbig, bbig = _pack_weights(params, D, Dp)
    xg = jnp.pad(x.reshape(num_agents, num_entities, C),
                 ((0, 0), (0, Ep - num_entities), (0, 0))).astype(jnp.bfloat16)

    if not aggregate:
        # Only the (agent a, entity a) diagonal target row is consumed -> use the
        # diagonal-row kernel (O(Ep) scores per graph, (A, 1, Ep) mask slab).
        assert num_agents <= num_entities, "diagonal extraction needs A <= E"
        xd = x.reshape(num_agents, num_entities, C)[
            jnp.arange(num_agents), jnp.arange(num_agents)][:, None, :]
        xd = xd.astype(jnp.bfloat16)                                    # (A, 1, C)
        # Edges whose target is the diagonal node go to row 0; all others are
        # diverted to trash row 1 so colliding sources cannot clobber row 0.
        row_sel = jnp.where(lt == g, 0, 1)
        slab_d = jnp.full((num_agents, 2, Ep), _NO_EDGE, jnp.bfloat16
                          ).at[g, row_sel, ls].set(ea)[:, :1, :]        # (A, 1, Ep)

        w_src = jnp.concatenate([wbig[:, Dp:2 * Dp], wbig[:, 3 * Dp:4 * Dp]], axis=1)
        b_src = jnp.concatenate([bbig[:, Dp:2 * Dp], bbig[:, 3 * Dp:4 * Dp]], axis=1)
        w_tgt = jnp.concatenate([wbig[:, 0:Dp], wbig[:, 2 * Dp:3 * Dp]], axis=1)
        b_tgt = jnp.concatenate([bbig[:, 0:Dp], bbig[:, 2 * Dp:3 * Dp]], axis=1)

        out = unimp_diag_pallas(xg, xd, slab_d, w_src, b_src, w_tgt, b_tgt, D=D)
        return out[:, 0, :D]                                            # (A, D)

    # aggregate=True: all node outputs, then global mean pool over `batch`.
    slab = jnp.full((num_agents, Ep, Ep), _NO_EDGE, jnp.bfloat16
                    ).at[g, lt, ls].set(ea)                              # one scatter
    out_p = unimp_full_pallas(xg, slab, wbig, bbig, D=D)                # (A, Ep, Dp)
    node_out = out_p[:, :num_entities, :D].reshape(N, D)
    sums = jax.ops.segment_sum(node_out, batch, num_segments=num_agents)
    cnts = jax.ops.segment_sum(jnp.ones((N,), jnp.float32), batch,
                               num_segments=num_agents)
    return sums / cnts[:, None]


# ---------------------------------------------------------------------------
# Pure-JAX edge-list reference (mirrors the PyTorch/PyG semantics).
# ---------------------------------------------------------------------------
def reference_layer(x, edge_index, edge_attr, params):
    N = x.shape[0]
    D = params["w1"].shape[0]
    src, tgt = edge_index[0], edge_index[1]
    lin = lambda w, b, v: v @ w.T + b
    xi, xj = x[tgt], x[src]
    x3 = lin(params["w3"], params["b3"], xi)
    x4 = lin(params["w4"], params["b4"], xj)
    e5 = edge_attr @ params["w5"].T + params["b5"]
    scores = jnp.sum(x3 * (x4 + e5), axis=-1) / jnp.sqrt(jnp.float32(D))
    smax = jax.ops.segment_max(scores, tgt, num_segments=N)
    ex = jnp.exp(scores - smax[tgt])
    ssum = jax.ops.segment_sum(ex, tgt, num_segments=N)
    alpha = ex / ssum[tgt]
    msg = alpha[:, None] * lin(params["w2"], params["b2"], xj)
    aggr = jax.ops.segment_sum(msg, tgt, num_segments=N)
    return lin(params["w1"], params["b1"], x) + aggr


if __name__ == "__main__":
    # Small synthetic batched graph: num_agents graphs, num_entities nodes each.
    num_agents, num_entities = 4, 6
    N = num_agents * num_entities            # 24 nodes total
    C_in, D = 8, 16

    key = jax.random.PRNGKey(0)
    ks = jax.random.split(key, 12)
    params = {
        "w1": 0.1 * jax.random.normal(ks[0], (D, C_in), jnp.float32),
        "b1": 0.1 * jax.random.normal(ks[1], (D,), jnp.float32),
        "w2": 0.1 * jax.random.normal(ks[2], (D, C_in), jnp.float32),
        "b2": 0.1 * jax.random.normal(ks[3], (D,), jnp.float32),
        "w3": 0.1 * jax.random.normal(ks[4], (D, C_in), jnp.float32),
        "b3": 0.1 * jax.random.normal(ks[5], (D,), jnp.float32),
        "w4": 0.1 * jax.random.normal(ks[6], (D, C_in), jnp.float32),
        "b4": 0.1 * jax.random.normal(ks[7], (D,), jnp.float32),
        "w5": 0.1 * jax.random.normal(ks[8], (D, 1), jnp.float32),
        "b5": 0.1 * jax.random.normal(ks[9], (D,), jnp.float32),
    }

    x = jax.random.normal(ks[10], (N, C_in), jnp.float32)

    # Fully connected (no self loops) within each graph, global node indices.
    srcs, tgts = [], []
    for gi in range(num_agents):
        base = gi * num_entities
        for a in range(num_entities):
            for b in range(num_entities):
                if a != b:
                    srcs.append(base + a)
                    tgts.append(base + b)
    edge_index = jnp.asarray(np.stack([srcs, tgts]), jnp.int32)          # (2, E)
    E = edge_index.shape[1]
    edge_attr = jax.random.normal(ks[11], (E, 1), jnp.float32)
    batch = jnp.repeat(jnp.arange(num_agents), num_entities)

    # Run both module paths (aggregate=False uses the diagonal-row kernel,
    # aggregate=True uses the full-node kernel).
    out_diag = unimp_gnn_forward(x, edge_index, edge_attr, params,
                                 num_agents, aggregate=False)
    out_pool = unimp_gnn_forward(x, edge_index, edge_attr, params,
                                 num_agents, aggregate=True, batch=batch)
    out_diag, out_pool = jax.block_until_ready((out_diag, out_pool))

    # Correctness check against the pure-JAX edge-list reference.  Tolerance
    # accounts for bf16 MXU operands + EUP approx reciprocal + weight folding.
    node_ref = reference_layer(x, edge_index, edge_attr, params)
    ref_diag = node_ref.reshape(num_agents, num_entities, -1)[
        jnp.arange(num_agents), jnp.arange(num_agents)]
    ref_pool = node_ref.reshape(num_agents, num_entities, -1).mean(axis=1)
    np.testing.assert_allclose(np.asarray(out_diag), np.asarray(ref_diag),
                               rtol=2e-2, atol=2e-2)
    np.testing.assert_allclose(np.asarray(out_pool), np.asarray(ref_pool),
                               rtol=2e-2, atol=2e-2)

    print("KERNEL_OK")
</pallas_src>

<mosaic_0001>
module attributes {stable_mosaic.version = 11 : i64} {
  func.func @unimp_diag_kernel(%arg0: i32, %arg1: memref<4x8x8xbf16, #tpu.memory_space<vmem>>, %arg2: memref<4x1x8xbf16, #tpu.memory_space<vmem>>, %arg3: memref<4x1x8xbf16, #tpu.memory_space<vmem>>, %arg4: memref<8x256xbf16, #tpu.memory_space<vmem>>, %arg5: memref<1x256xf32, #tpu.memory_space<vmem>>, %arg6: memref<8x256xbf16, #tpu.memory_space<vmem>>, %arg7: memref<1x256xf32, #tpu.memory_space<vmem>>, %arg8: memref<4x1x128xf32, #tpu.memory_space<vmem>>) attributes {dimension_semantics = [#tpu.dimension_semantics<parallel>], iteration_bounds = array<i64: 1>, scalar_prefetch = 0 : i64, scratch_operands = 0 : i64, tpu.core_type = #tpu.core_type<tc>, window_params = [{transform_indices = @transform_0, window_bounds = array<i64: 4, 8, 8>}, {transform_indices = @transform_1, window_bounds = array<i64: 4, 1, 8>}, {transform_indices = @transform_2, window_bounds = array<i64: 4, 1, 8>}, {pipeline_mode = #tpu.pipeline_mode<synchronous>, transform_indices = @transform_3, window_bounds = array<i64: 8, 256>}, {pipeline_mode = #tpu.pipeline_mode<synchronous>, transform_indices = @transform_4, window_bounds = array<i64: 1, 256>}, {pipeline_mode = #tpu.pipeline_mode<synchronous>, transform_indices = @transform_5, window_bounds = array<i64: 8, 256>}, {pipeline_mode = #tpu.pipeline_mode<synchronous>, transform_indices = @transform_6, window_bounds = array<i64: 1, 256>}, {transform_indices = @transform_7, window_bounds = array<i64: 4, 1, 128>}]} {
    %c0 = arith.constant 0 : index
    %c0_0 = arith.constant 0 : index
    %c0_1 = arith.constant 0 : index
    %0 = vector.load %arg1[%c0, %c0_0, %c0_1] : memref<4x8x8xbf16, #tpu.memory_space<vmem>>, vector<4x8x8xbf16>
    %1 = vector.shape_cast %0 : vector<4x8x8xbf16> to vector<32x8xbf16>
    %c0_2 = arith.constant 0 : index
    %c0_3 = arith.constant 0 : index
    %2 = vector.load %arg4[%c0_2, %c0_3] : memref<8x256xbf16, #tpu.memory_space<vmem>>, vector<8x256xbf16>
    %cst = arith.constant dense<0.000000e+00> : vector<32x256xf32>
    %3 = tpu.matmul %1, %2, %cst {dimension_numbers = #tpu.dot_dimension_numbers<[1], [0], [0], [1], [0, 0, 1, 1], [], []>} : vector<32x8xbf16>, vector<8x256xbf16>, vector<32x256xf32> -> vector<32x256xf32>
    %c0_4 = arith.constant 0 : index
    %c0_5 = arith.constant 0 : index
    %4 = vector.load %arg5[%c0_4, %c0_5] : memref<1x256xf32, #tpu.memory_space<vmem>>, vector<1x256xf32>
    %5 = vector.broadcast %4 : vector<1x256xf32> to vector<32x256xf32>
    %6 = arith.addf %3, %5 : vector<32x256xf32>
    %7 = vector.extract_strided_slice %6 {offsets = [0, 0], sizes = [32, 128], strides = [1, 1]} : vector<32x256xf32> to vector<32x128xf32>
    %8 = vector.shape_cast %7 : vector<32x128xf32> to vector<4x8x128xf32>
    %9 = vector.extract_strided_slice %6 {offsets = [0, 128], sizes = [32, 128], strides = [1, 1]} : vector<32x256xf32> to vector<32x128xf32>
    %10 = vector.shape_cast %9 : vector<32x128xf32> to vector<4x8x128xf32>
    %c0_6 = arith.constant 0 : index
    %c0_7 = arith.constant 0 : index
    %c0_8 = arith.constant 0 : index
    %11 = vector.load %arg2[%c0_6, %c0_7, %c0_8] : memref<4x1x8xbf16, #tpu.memory_space<vmem>>, vector<4x1x8xbf16>
    %12 = vector.shape_cast %11 : vector<4x1x8xbf16> to vector<4x8xbf16>
    %c0_9 = arith.constant 0 : index
    %c0_10 = arith.constant 0 : index
    %13 = vector.load %arg6[%c0_9, %c0_10] : memref<8x256xbf16, #tpu.memory_space<vmem>>, vector<8x256xbf16>
    %cst_11 = arith.constant dense<0.000000e+00> : vector<4x256xf32>
    %14 = tpu.matmul %12, %13, %cst_11 {dimension_numbers = #tpu.dot_dimension_numbers<[1], [0], [0], [1], [0, 0, 1, 1], [], []>} : vector<4x8xbf16>, vector<8x256xbf16>, vector<4x256xf32> -> vector<4x256xf32>
    %c0_12 = arith.constant 0 : index
    %c0_13 = arith.constant 0 : index
    %15 = vector.load %arg7[%c0_12, %c0_13] : memref<1x256xf32, #tpu.memory_space<vmem>>, vector<1x256xf32>
    %16 = vector.broadcast %15 : vector<1x256xf32> to vector<4x256xf32>
    %17 = arith.addf %14, %16 : vector<4x256xf32>
    %18 = vector.extract_strided_slice %17 {offsets = [0, 0], sizes = [4, 128], strides = [1, 1]} : vector<4x256xf32> to vector<4x128xf32>
    %19 = vector.extract_strided_slice %17 {offsets = [0, 128], sizes = [4, 128], strides = [1, 1]} : vector<4x256xf32> to vector<4x128xf32>
    %20 = vector.extract_strided_slice %17 {offsets = [0, 145], sizes = [4, 1], strides = [1, 1]} : vector<4x256xf32> to vector<4x1xf32>
    %21 = vector.shape_cast %19 : vector<4x128xf32> to vector<4x1x128xf32>
    %22 = vector.broadcast %21 : vector<4x1x128xf32> to vector<4x8x128xf32>
    %23 = arith.mulf %22, %10 : vector<4x8x128xf32>
    %cst_14 = arith.constant dense<0.000000e+00> : vector<4x8xf32>
    %24 = vector.multi_reduction <add>, %23, %cst_14 [2] : vector<4x8x128xf32> to vector<4x8xf32>
    %c0_15 = arith.constant 0 : index
    %c0_16 = arith.constant 0 : index
    %c0_17 = arith.constant 0 : index
    %25 = vector.load %arg3[%c0_15, %c0_16, %c0_17] : memref<4x1x8xbf16, #tpu.memory_space<vmem>>, vector<4x1x8xbf16>
    %26 = vector.shape_cast %25 : vector<4x1x8xbf16> to vector<4x8xbf16>
    %27 = arith.extf %26 : vector<4x8xbf16> to vector<4x8xf32>
    %cst_18 = arith.constant -1.000000e+29 : f32
    %28 = vector.broadcast %cst_18 : f32 to vector<4x8xf32>
    %29 = arith.cmpf ogt, %27, %28 : vector<4x8xf32>
    %cst_19 = arith.constant 0.000000e+00 : f32
    %30 = vector.broadcast %cst_19 : f32 to vector<4x8xf32>
    %31 = arith.select %29, %27, %30 : vector<4x8xi1>, vector<4x8xf32>
    %32 = vector.broadcast %20 : vector<4x1xf32> to vector<4x8xf32>
    %33 = arith.mulf %32, %31 : vector<4x8xf32>
    %34 = arith.addf %24, %33 : vector<4x8xf32>
    %cst_20 = arith.constant -1.000000e+30 : f32
    %35 = vector.broadcast %cst_20 : f32 to vector<4x8xf32>
    %36 = arith.select %29, %34, %35 : vector<4x8xi1>, vector<4x8xf32>
    %cst_21 = arith.constant dense<0xFF800000> : vector<4xf32>
    %37 = vector.multi_reduction <maximumf>, %36, %cst_21 [1] : vector<4x8xf32> to vector<4xf32>
    %38 = vector.shape_cast %37 : vector<4xf32> to vector<4x1xf32>
    %39 = vector.broadcast %38 : vector<4x1xf32> to vector<4x8xf32>
    %40 = arith.subf %36, %39 : vector<4x8xf32>
    %41 = math.exp %40 : vector<4x8xf32>
    %cst_22 = arith.constant dense<0.000000e+00> : vector<4xf32>
    %42 = vector.multi_reduction <add>, %41, %cst_22 [1] : vector<4x8xf32> to vector<4xf32>
    %43 = vector.shape_cast %42 : vector<4xf32> to vector<4x1xf32>
    %44 = tpu.reciprocal %43 {approx = true} : vector<4x1xf32> -> vector<4x1xf32>
    %45 = vector.broadcast %44 : vector<4x1xf32> to vector<4x8xf32>
    %46 = arith.mulf %41, %45 : vector<4x8xf32>
    %cst_23 = arith.constant -1.000000e+29 : f32
    %47 = vector.broadcast %cst_23 : f32 to vector<4x1xf32>
    %48 = arith.cmpf ogt, %38, %47 : vector<4x1xf32>
    %49 = arith.extui %48 : vector<4x1xi1> to vector<4x1xi32>
    %50 = arith.sitofp %49 : vector<4x1xi32> to vector<4x1xf32>
    %51 = vector.shape_cast %46 : vector<4x8xf32> to vector<4x8x1xf32>
    %52 = vector.broadcast %51 : vector<4x8x1xf32> to vector<4x8x128xf32>
    %53 = arith.mulf %52, %8 : vector<4x8x128xf32>
    %cst_24 = arith.constant dense<0.000000e+00> : vector<4x128xf32>
    %54 = vector.multi_reduction <add>, %53, %cst_24 [1] : vector<4x8x128xf32> to vector<4x128xf32>
    %55 = vector.broadcast %50 : vector<4x1xf32> to vector<4x128xf32>
    %56 = arith.mulf %54, %55 : vector<4x128xf32>
    %57 = arith.addf %18, %56 : vector<4x128xf32>
    %c0_25 = arith.constant 0 : index
    %c0_26 = arith.constant 0 : index
    %c0_27 = arith.constant 0 : index
    %58 = vector.load %arg8[%c0_25, %c0_26, %c0_27] : memref<4x1x128xf32, #tpu.memory_space<vmem>>, vector<4x1x128xf32>
    %59 = vector.shape_cast %58 : vector<4x1x128xf32> to vector<4x128xf32>
    %60 = vector.shape_cast %57 : vector<4x128xf32> to vector<4x1x128xf32>
    tpu.vector_store %arg8[%c0_25, %c0_26, %c0_27], %60 {strides = array<i32>} : memref<4x1x128xf32, #tpu.memory_space<vmem>>, vector<4x1x128xf32>,
    return
  }
  func.func @transform_0(%arg0: i32) -> (i32, i32, i32) {
    %c0_i32 = arith.constant 0 : i32
    %c0_i32_0 = arith.constant 0 : i32
    %c0_i32_1 = arith.constant 0 : i32
    return %arg0, %c0_i32, %c0_i32_0 : i32, i32, i32
  }
  func.func @transform_1(%arg0: i32) -> (i32, i32, i32) {
    %c0_i32 = arith.constant 0 : i32
    %c0_i32_0 = arith.constant 0 : i32
    %c0_i32_1 = arith.constant 0 : i32
    return %arg0, %c0_i32, %c0_i32_0 : i32, i32, i32
  }
  func.func @transform_2(%arg0: i32) -> (i32, i32, i32) {
    %c0_i32 = arith.constant 0 : i32
    %c0_i32_0 = arith.constant 0 : i32
    %c0_i32_1 = arith.constant 0 : i32
    return %arg0, %c0_i32, %c0_i32_0 : i32, i32, i32
  }
  func.func @transform_3(%arg0: i32) -> (i32, i32) {
    %c0_i32 = arith.constant 0 : i32
    %c0_i32_0 = arith.constant 0 : i32
    %c0_i32_1 = arith.constant 0 : i32
    return %c0_i32, %c0_i32_0 : i32, i32
  }
  func.func @transform_4(%arg0: i32) -> (i32, i32) {
    %c0_i32 = arith.constant 0 : i32
    %c0_i32_0 = arith.constant 0 : i32
    %c0_i32_1 = arith.constant 0 : i32
    return %c0_i32, %c0_i32_0 : i32, i32
  }
  func.func @transform_5(%arg0: i32) -> (i32, i32) {
    %c0_i32 = arith.constant 0 : i32
    %c0_i32_0 = arith.constant 0 : i32
    %c0_i32_1 = arith.constant 0 : i32
    return %c0_i32, %c0_i32_0 : i32, i32
  }
  func.func @transform_6(%arg0: i32) -> (i32, i32) {
    %c0_i32 = arith.constant 0 : i32
    %c0_i32_0 = arith.constant 0 : i32
    %c0_i32_1 = arith.constant 0 : i32
    return %c0_i32, %c0_i32_0 : i32, i32
  }
  func.func @transform_7(%arg0: i32) -> (i32, i32, i32) {
    %c0_i32 = arith.constant 0 : i32
    %c0_i32_0 = arith.constant 0 : i32
    %c0_i32_1 = arith.constant 0 : i32
    return %arg0, %c0_i32, %c0_i32_0 : i32, i32, i32
  }
}

</mosaic_0001>

<bundles_post_ra>
// kernel: tpu_custom_call.1
= control target key start
LH: loop header
LB: loop body
LE: loop exit
PB: predicated region body
PF: predicated region fallthrough
CT: control target
= control target key end

     0   :  { %12 = vsyncpa [#allocation3], 0  ;;  %s884_s0 = inlined_call_operand.hbm [shape: bf16[4,8,8], index: 0, kind: input, shape index: {}]   ;;  %s885_s1 = inlined_call_operand.vmem [shape: bf16[4,1,8], index: 1, kind: input, shape index: {}]   ;;  %s886_s2 = inlined_call_operand.vmem [shape: bf16[4,1,8], index: 2, kind: input, shape index: {}]   ;;  %s887_s3 = inlined_call_operand.vmem [shape: bf16[8,256], index: 3, kind: input, shape index: {}]   ;;  %s888_s4 = inlined_call_operand.vmem [shape: f32[1,256], index: 4, kind: input, shape index: {}]   ;;  %s889_s5 = inlined_call_operand.hbm [shape: bf16[8,256], index: 5, kind: input, shape index: {}]   ;;  %s890_s6 = inlined_call_operand.vmem [shape: f32[1,256], index: 6, kind: input, shape index: {}]   ;;  %s891_s7 = inlined_call_operand.hbm [shape: f32[4,1,128], index: 7, kind: output, shape index: {}]  }
   0x1   :  { %13 = vsyncpa [#allocation6], 0 }
   0x2   :  { %14 = vsyncpa [#allocation4], 0  ;;  %s19_s26 = sshll.u32 %s884_s0, 4  ;;  %s696_s27 = smov [#allocation2]   ;;  %s20_s26 = int_to_ptr.hbm [resolvable:$true] %s19_s26 }
   0x3   :  { %s21_s28 = sshll.u32 %s696_s27, 4  ;;  %s41_s8 = sshll.u32 %s889_s5, 4  ;;  %s22_s28 = int_to_ptr.vmem [resolvable:$true] %s21_s28  ;;  %s42_s8 = int_to_ptr.hbm [resolvable:$true] %s41_s8 }
   0x4   :  { %s697_s9 = smov 64   ;;  %s698_s10 = smov 4  }
   0x5   :  { %27 = dma.hbm_to_vmem [thread:$0]  %s20_s26, 256, %s22_s28, [#allocation3], %s697_s9, %s697_s9, %s698_s10  }
   0x6   :  { %s699_s11 = smov [#allocation5]  }
   0x7   :  { %s43_s12 = sshll.u32 %s699_s11, 4  ;;  %s44_s12 = int_to_ptr.vmem [resolvable:$true] %s43_s12 }
   0x8   :  { %46 = dma.hbm_to_vmem [thread:$0]  %s42_s8, 128, %s44_s12, [#allocation6]  }
   0x9   :  { %690 = dma.done.wait [#allocation3], 256  }
   0xa   :  { %691 = vsyncadd [#allocation3], 4294967040 }
   0xb   :  { %692 = dma.done.wait [#allocation6], 128  }
   0xc   :  { %693 = vsyncadd [#allocation6], 4294967168  ;;  %v757_v0 = vld [vmem:[%s887_s3] sm:$0xff]  ;;  %v759_v1 = vld [vmem:[#allocation5] sm:$0xff]  ;;  %vm91_vm0 = vcmask 1043456   ;;  %vm84_vm1 = vcmask 64512   ;;  %v276_v53 = vlaneseq }
   0xd   :  { %v81_v2 = vunpack.c.h.b16 %v757_v0  ;;  %v179_v3 = vunpack.c.h.b16 %v759_v1  ;;  %v136_v4 = vld [vmem:[%s885_s1] sm:$0x1]  ;;  %v767_v8 = vld [vmem:[#allocation2] sm:$0xff]  ;;  %v137_v10 = vld [vmem:[%s885_s1 + $0x1] sm:$0x1]  ;;  %vm168_vm2 = vcmask 1041409  }
   0xe   :  { %148 = vst [vmem:[#allocation1] ss:$9 sm:$0xff] %v136_v4  ;;  %v138_v12 = vld [vmem:[%s885_s1 + $0x2] sm:$0x1]  ;;  %v778_v14 = vld [vmem:[#allocation2 + $0x8] sm:$0xff]  ;;  %vm171_vm3 = vcmask 1042434  }
   0xf   :  { %v83_v5 = vpack.c.b16 %v81_v2, %v81_v2  ;;  %v181_v6 = vpack.c.b16 %v179_v3, %v179_v3  ;;  %v139_v15 = vld [vmem:[%s885_s1 + $0x3] sm:$0x1]  ;;  %vm174_vm4 = vcmask 1043459   ;;  %v700_v30 = vmov 17   ;;  %v795_v33 = vld [vmem:[%s890_s6] sm:$0x3] }
  0x10   :  { %601 = vset.pattern.permute.xlu0 %v700_v30  ;;  %v800_v34 = vld [vmem:[%s888_s4] sm:$0x3]  ;;  %v144_v35 = vperm.slane %v795_v33, 1  ;;  %v277_v54 = vshrl.u32 %v276_v53, 7  ;;  %v243_v60 = vld [vmem:[%s886_s2 + $0x2] sm:$0x1] }
  0x11   :  { %v96_v7 = vsel %vm91_vm0, %v83_v5, 0  ;;  %v189_v9 = vsel %vm91_vm0, %v181_v6, 0  ;;  %v66_v36 = vperm.slane %v800_v34, 1  ;;  %v241_v58 = vld [vmem:[%s886_s2] sm:$0x1]  ;;  %v247_v2 = vunpack.c.l.bf16 %v243_v60  ;;  %s558_s9 = sshll.u32 %s891_s7, 4  ;;  %s559_s9 = int_to_ptr.hbm [resolvable:$true] %s558_s9 }
  0x12   :  { %124 = vmatpush.bf16.msra.mxu1 %v96_v7  ;;  %211 = vmatpush.bf16.msra.mxu3 %v189_v9  ;;  %v242_v59 = vld [vmem:[%s886_s2 + $0x1] sm:$0x1]  ;;  %v245_v61 = vunpack.c.l.bf16 %v241_v58  ;;  %v244_v63 = vld [vmem:[%s886_s2 + $0x3] sm:$0x1]  ;;  %vm392_vm9 = vcmask 60416   ;;  %v80_v6 = vunpack.c.l.b16 %v757_v0  ;;  %s705_s2 = smov [#allocation7]  }
  0x13   :  { %603 = vset.pattern.permute.xlu2 %v277_v54  ;;  %602 = vset.pattern.permute.xlu1 %v277_v54  ;;  %v246_v62 = vunpack.c.l.bf16 %v242_v59  ;;  %v248_v5 = vunpack.c.l.bf16 %v244_v63  ;;  %vm825_vm7 = vcmp.gt.f32.partialorder %v247_v2, -1e+29  ;;  %s556_s29 = sshll.u32 %s705_s2, 4  ;;  %s706_s10 = smov 16   ;;  %s557_s29 = int_to_ptr.vmem [resolvable:$true] %s556_s29 }
  0x14   :  { %vm817_vm5 = vcmp.gt.f32.partialorder %v245_v61, -1e+29  ;;  %s707_s11 = smov 1  }
  0x15   :  { %582 = vmatmul.msk.bf16.vlgmr.msra.gmra.mxu1 %vm84_vm1, %v767_v8  ;;  %v149_v11 = vld [vmem:[#allocation1] sm:$0xf]  ;;  %vm821_vm6 = vcmp.gt.f32.partialorder %v246_v62, -1e+29  ;;  %v253_v7 = vsel %vm817_vm5, %v245_v61, 0.0  ;;  %v367_v61 = vand.u32 127, %v276_v53 }
  0x16   :  { %152 = vst [vmem:[#allocation1] ss:$9 sm:$0xff] %v137_v10  ;;  %v163_v19 = vunpack.c.l.b16 %v149_v11  ;;  %v254_v9 = vsel %vm821_vm6, %v246_v62, 0.0  ;;  %vm833_vm8 = vcmp.gt.f32.partialorder %v248_v5, -1e+29  ;;  %v255_v11 = vsel %vm825_vm7, %v247_v2, 0.0 }
  0x1d   :  { %v153_v13 = vld [vmem:[#allocation1] sm:$0xf] }
  0x1e   :  { %156 = vst [vmem:[#allocation1] ss:$9 sm:$0xff] %v138_v12  ;;  %v164_v16 = vunpack.c.l.b16 %v153_v13  ;;  %v265_v12 = vperm.slane %v253_v7, 0  ;;  %v266_v13 = vperm.slane %v254_v9, 0 }
  0x20   :  { %v167_v20 = vrot.slane %v164_v16, 7  ;;  %v267_v16 = vperm.slane %v255_v11, 0 }
  0x22   :  { %v169_v22 = vsel %vm168_vm2, %v167_v20, %v163_v19 }
  0x25   :  { %v157_v17 = vld [vmem:[#allocation1] sm:$0xf]  ;;  %583 = vmatmul.msk.bf16.gmra.mxu1 %vm84_vm1, %v778_v14 }
  0x26   :  { %160 = vst [vmem:[#allocation1] ss:$9 sm:$0xff] %v139_v15  ;;  %v165_v18 = vunpack.c.l.b16 %v157_v17  ;;  %v256_v15 = vsel %vm833_vm8, %v248_v5, 0.0  ;;  %v269_v17 = vsel %vm168_vm2, %v266_v13, %v265_v12 }
  0x27   :  { %v270_v19 = vsel %vm171_vm3, %v267_v16, %v269_v17 }
  0x28   :  { %v170_v21 = vrot.slane %v165_v18, 6  ;;  %v268_v18 = vperm.slane %v256_v15, 0 }
  0x2a   :  { %v172_v25 = vsel %vm171_vm3, %v170_v21, %v169_v22  ;;  %v271_v20 = vsel %vm174_vm4, %v268_v18, %v270_v19 }
  0x2d   :  { %v161_v23 = vld [vmem:[#allocation1] sm:$0xf] }
  0x2e   :  { %v166_v24 = vunpack.c.l.b16 %v161_v23 }
  0x30   :  { %v173_v26 = vrot.slane %v166_v24, 5 }
  0x32   :  { %v175_v27 = vsel %vm174_vm4, %v173_v26, %v172_v25 }
  0x33   :  { %v788_v28 = vpack.c.b16 %v175_v27, %v175_v27  ;;  %v701_v27 = vmov 0  }
  0x35   :  { %585 = vmatmul.msk.bf16.vlgmr.msra.gmra.mxu3 %vm84_vm1, %v788_v28 }
  0x92   :  { %v126_v29 = vpop.f32.mrf.mxu1 }
  0x93   :  { %v127_v55 = vadd.f32 %v126_v29, %v66_v36 }
  0x9a   :  { %v128_v31 = vpop.f32.mrf.mxu1 }
  0x9b   :  { %v129_v40 = vadd.f32 %v128_v31, %v66_v36 }
  0xa2   :  { %v131_v32 = vpop.f32.mrf.mxu1 }
  0xa3   :  { %v132_v41 = vadd.f32 %v131_v32, %v66_v36 }
  0xaa   :  { %v133_v38 = vpop.f32.mrf.mxu1 }
  0xab   :  { %v134_v42 = vadd.f32 %v133_v38, %v66_v36 }
  0xb8   :  { %v213_v37 = vpop.f32.mrf.mxu3 }
  0xb9   :  { %v214_v39 = vadd.f32 %v213_v37, %v144_v35 }
  0xbb   :  { %258 = vperm.xlu0 %601, %v214_v39   ;;  %v219_v43 = vrot.slane %v214_v39, 2  ;;  %v218_v44 = vrot.slane %v214_v39, 1  ;;  %v220_v45 = vrot.slane %v214_v39, 3  ;;  %v221_v56 = vperm.slane %v214_v39, 0 }
  0xbd   :  { %v223_v46 = vperm.slane %v219_v43, 0  ;;  %v222_v47 = vperm.slane %v218_v44, 0  ;;  %v224_v48 = vperm.slane %v220_v45, 0  ;;  %v229_v57 = vmul.f32 %v221_v56, %v127_v55 }
  0xbf   :  { %v231_v49 = vmul.f32 %v223_v46, %v132_v41  ;;  %v230_v50 = vmul.f32 %v222_v47, %v129_v40  ;;  %v232_v51 = vmul.f32 %v224_v48, %v134_v42 }
  0xc0   :  { %v215_v52 = vpop.f32.mrf.mxu3 }
  0xc1   :  { %237 = vadd.xlane.f32.xlu2 %v231_v49  ;;  %235 = vadd.xlane.f32.xlu1 %v230_v50 }
  0xc3   :  { %604 = vset.pattern.permute.xlu0 %v277_v54 }
  0xe5   :  { %233 = vadd.xlane.f32.xlu0 %v229_v57 }
 0x12d   :  { %v259_v21 = vpop.permute.xlu0 %258 }
 0x12e   :  { %v273_v22 = vmul.f32 %v271_v20, %v259_v21 }
 0x130   :  { %v282_v23 = vperm.slane %v273_v22, 1  ;;  %v275_v24 = vperm.slane %v273_v22, 0  ;;  %v296_v25 = vperm.slane %v273_v22, 3  ;;  %v289_v26 = vperm.slane %v273_v22, 2 }
 0x131   :  { %v82_v22 = vpack.c.b16 %v80_v6, %v80_v6 }
 0x132   :  { %287 = vperm.xlu2 %603, %v282_v23   ;;  %280 = vperm.xlu1 %602, %v275_v24   ;;  %v702_v23 = vmov 269488144  }
 0x133   :  { %301 = vperm.xlu0 %604, %v296_v25   ;;  %v398_v24 = vunpack.c.l.s4 %v702_v23  ;;  %v703_v25 = vmov 842150450   ;;  %v93_v10 = vsel %vm91_vm0, %v82_v22, 0 }
 0x134   :  { %v238_v29 = vpop.xlane.xlu2 %237  ;;  %v236_v30 = vpop.xlane.xlu1 %235  ;;  %105 = vmatpush.bf16.msra.mxu0 %v93_v10 }
 0x137   :  { %580 = vmatmul.msk.bf16.vlgmr.msra.gmra.mxu0 %vm84_vm1, %v767_v8 }
 0x13a   :  { %294 = vperm.xlu2 %603, %v289_v26   ;;  %606 = vset.pattern.permute.xlu1 %v701_v27  ;;  %v402_v26 = vunpack.c.l.s4 %v703_v25 }
 0x142   :  { %605 = vset.pattern.permute.xlu2 %v701_v27  ;;  %v399_v27 = vunpack.c.0.s8 %v398_v24 }
 0x147   :  { %581 = vmatmul.msk.bf16.gmra.mxu0 %vm84_vm1, %v778_v14 }
 0x158   :  { %v234_v39 = vpop.xlane.xlu0 %233 }
 0x15c   :  { %239 = vadd.xlane.f32.xlu1 %v232_v51 }
 0x18c   :  { %v288_v31 = vpop.permute.xlu2 %287 }
 0x18d   :  { %v308_v32 = vadd.f32 %v288_v31, %v236_v30 }
 0x18f   :  { %v318_v35 = vrot.slane %v308_v32, 2  ;;  %v319_v36 = vrot.slane %v308_v32, 4  ;;  %v320_v37 = vrot.slane %v308_v32, 6  ;;  %336 = vst [vmem:[#allocation1 + $0x20] ss:$4 sm:$0xff] %v308_v32 }
 0x191   :  { %338 = vst [vmem:[#allocation1 + $0x21] ss:$4 sm:$0xff] %v318_v35 }
 0x192   :  { %340 = vst [vmem:[#allocation1 + $0x22] ss:$4 sm:$0xff] %v319_v36 }
 0x193   :  { %342 = vst [vmem:[#allocation1 + $0x23] ss:$4 sm:$0xff] %v320_v37 }
 0x194   :  { %v295_v45 = vpop.permute.xlu2 %294 }
 0x195   :  { %v309_v46 = vadd.f32 %v295_v45, %v238_v29  ;;  %v403_v29 = vunpack.c.0.s8 %v402_v26 }
 0x197   :  { %v321_v47 = vrot.slane %v309_v46, 2  ;;  %v322_v49 = vrot.slane %v309_v46, 4  ;;  %v323_v50 = vrot.slane %v309_v46, 6 }
 0x19a   :  { %v343_v38 = vld.sshfl [vmem:[#allocation1 + $0x20] sm:$0xff pattern:$0x73625140] }
 0x19b   :  { %358 = vperm.xlu1 %606, %v343_v38  }
 0x1a3   :  { %607 = vset.pattern.permute.xlu1 %v277_v54 }
 0x1a4   :  { %v281_v40 = vpop.permute.xlu1 %280 }
 0x1a5   :  { %v307_v41 = vadd.f32 %v281_v40, %v234_v39  ;;  %v302_v52 = vpop.permute.xlu0 %301 }
 0x1a7   :  { %v315_v42 = vrot.slane %v307_v41, 2  ;;  %v316_v43 = vrot.slane %v307_v41, 4  ;;  %v317_v44 = vrot.slane %v307_v41, 6  ;;  %327 = vst [vmem:[#allocation1] ss:$4 sm:$0xff] %v307_v41 }
 0x1a9   :  { %329 = vst [vmem:[#allocation1 + $0x1] ss:$4 sm:$0xff] %v315_v42 }
 0x1aa   :  { %331 = vst [vmem:[#allocation1 + $0x2] ss:$4 sm:$0xff] %v316_v43 }
 0x1ab   :  { %333 = vst [vmem:[#allocation1 + $0x3] ss:$4 sm:$0xff] %v317_v44 }
 0x1b2   :  { %v334_v48 = vld.sshfl [vmem:[#allocation1] sm:$0xff pattern:$0x73625140] }
 0x1b3   :  { %355 = vperm.xlu2 %605, %v334_v48   ;;  %344 = vst [vmem:[#allocation1] ss:$4 sm:$0xff] %v309_v46 }
 0x1b4   :  { %345 = vst [vmem:[#allocation1 + $0x1] ss:$4 sm:$0xff] %v321_v47 }
 0x1b5   :  { %346 = vst [vmem:[#allocation1 + $0x2] ss:$4 sm:$0xff] %v322_v49 }
 0x1b6   :  { %347 = vst [vmem:[#allocation1 + $0x3] ss:$4 sm:$0xff] %v323_v50 }
 0x1bd   :  { %v348_v51 = vld.sshfl [vmem:[#allocation1] sm:$0xff pattern:$0x73625140] }
 0x1be   :  { %361 = vperm.xlu2 %605, %v348_v51  }
 0x1cf   :  { %v240_v54 = vpop.xlane.xlu1 %239 }
 0x1d0   :  { %v310_v55 = vadd.f32 %v302_v52, %v240_v54 }
 0x1d2   :  { %v324_v56 = vrot.slane %v310_v55, 2  ;;  %v325_v57 = vrot.slane %v310_v55, 4  ;;  %v326_v58 = vrot.slane %v310_v55, 6  ;;  %349 = vst [vmem:[#allocation1 + $0x20] ss:$4 sm:$0xff] %v310_v55 }
 0x1d4   :  { %350 = vst [vmem:[#allocation1 + $0x21] ss:$4 sm:$0xff] %v324_v56  ;;  %v178_v56 = vunpack.c.l.b16 %v759_v1 }
 0x1d5   :  { %351 = vst [vmem:[#allocation1 + $0x22] ss:$4 sm:$0xff] %v325_v57 }
 0x1d6   :  { %352 = vst [vmem:[#allocation1 + $0x23] ss:$4 sm:$0xff] %v326_v58  ;;  %v180_v57 = vpack.c.b16 %v178_v56, %v178_v56 }
 0x1d8   :  { %v186_v14 = vsel %vm91_vm0, %v180_v57, 0 }
 0x1d9   :  { %198 = vmatpush.bf16.msra.mxu2 %v186_v14 }
 0x1dc   :  { %584 = vmatmul.msk.bf16.vlgmr.msra.gmra.mxu2 %vm84_vm1, %v788_v28  ;;  %v107_v28 = vpop.f32.mrf.mxu0 }
 0x1dd   :  { %v353_v59 = vld.sshfl [vmem:[#allocation1 + $0x20] sm:$0xff pattern:$0x73625140] }
 0x1de   :  { %364 = vperm.xlu2 %605, %v353_v59  }
 0x20d   :  { %v356_v60 = vpop.permute.xlu2 %355  ;;  %v359_v62 = vpop.permute.xlu1 %358 }
 0x20e   :  { %v369_v2 = vperm.slane %v359_v62, %v367_v61  ;;  %v368_v5 = vperm.slane %v356_v60, %v367_v61 }
 0x210   :  { %v377_v9 = vsel %vm821_vm6, %v369_v2, -1e+30  ;;  %v376_v11 = vsel %vm817_vm5, %v368_v5, -1e+30 }
 0x211   :  { %v385_v13 = vperm.slane %v377_v9, 0  ;;  %v384_v15 = vperm.slane %v376_v11, 0 }
 0x213   :  { %v388_v20 = vsel %vm168_vm2, %v385_v13, %v384_v15  ;;  %v109_v15 = vpop.f32.mrf.mxu0 }
 0x218   :  { %v362_v63 = vpop.permute.xlu2 %361 }
 0x219   :  { %v370_v7 = vperm.slane %v362_v63, %v367_v61 }
 0x21b   :  { %v378_v12 = vsel %vm825_vm7, %v370_v7, -1e+30 }
 0x21c   :  { %v386_v17 = vperm.slane %v378_v12, 0 }
 0x21e   :  { %v389_v4 = vsel %vm171_vm3, %v386_v17, %v388_v20 }
 0x238   :  { %v365_v16 = vpop.permute.xlu2 %364 }
 0x239   :  { %v371_v18 = vperm.slane %v365_v16, %v367_v61  ;;  %v65_v16 = vperm.slane %v800_v34, 0 }
 0x23b   :  { %v379_v53 = vsel %vm833_vm8, %v371_v18, -1e+30  ;;  %v112_v18 = vpop.f32.mrf.mxu0  ;;  %v108_v20 = vadd.f32 %v107_v28, %v65_v16  ;;  %v110_v24 = vadd.f32 %v109_v15, %v65_v16 }
 0x23c   :  { %v387_v19 = vperm.slane %v379_v53, 0 }
 0x23e   :  { %v390_v3 = vsel %vm174_vm4, %v387_v19, %v389_v4 }
 0x23f   :  { %v393_v21 = vsel %vm392_vm9, %v390_v3, -inf }
 0x240   :  { %394 = vmax.xlane.f32.xlu0 %v393_v21 }
 0x25f   :  { %v200_v19 = vpop.f32.mrf.mxu2 }
 0x267   :  { %v202_v22 = vpop.f32.mrf.mxu2 }
 0x2b3   :  { %v861_v30 = vpop.xlane.xlu0 %394 }
 0x2b4   :  { %v400_v31 = vperm.slane %v861_v30, %v399_v27  ;;  %v404_v32 = vperm.slane %v861_v30, %v403_v29  ;;  %vm458_vm10 = vcmp.gt.f32.partialorder %v861_v30, -1e+29 }
 0x2b6   :  { %v405_v0 = vrot.slane %v400_v31, 1  ;;  %v406_v35 = vrot.slane %v404_v32, 1  ;;  %v411_v36 = vsub.f32 %v376_v11, %v400_v31  ;;  %v413_v37 = vsub.f32 %v378_v12, %v404_v32  ;;  %v114_v32 = vpop.f32.mrf.mxu0 }
 0x2b8   :  { %v412_v38 = vsub.f32 %v377_v9, %v405_v0  ;;  %v414_v39 = vsub.f32 %v379_v53, %v406_v35  ;;  %v415_v40 = vmul.f32 1.442695, %v411_v36  ;;  %v419_v41 = vmul.f32 1.442695, %v413_v37 }
 0x2b9   :  { %v113_v53 = vadd.f32 %v112_v18, %v65_v16  ;;  %v115_v35 = vadd.f32 %v114_v32, %v65_v16 }
 0x2ba   :  { %608 = vpow2.f32 %v415_v40  ;;  %v417_v42 = vmul.f32 1.442695, %v412_v38  ;;  %v421_v43 = vmul.f32 1.442695, %v414_v39 }
 0x2bb   :  { %610 = vpow2.f32 %v419_v41 }
 0x2bc   :  { %612 = vpow2.f32 %v417_v42  ;;  %v704_v42 = vmov 0.0  }
 0x2bd   :  { %614 = vpow2.f32 %v421_v43  ;;  %v586_v43 = vsel %vm458_vm10, 1.0, %v704_v42 }
 0x2c0   :  { %v609_v8 = vpop.eup %608 }
 0x2c1   :  { %v611_v44 = vpop.eup %610  ;;  %v427_v47 = vperm.slane %v609_v8, 0 }
 0x2c2   :  { %v613_v45 = vpop.eup %612  ;;  %v429_v49 = vperm.slane %v611_v44, 0 }
 0x2c3   :  { %v615_v46 = vpop.eup %614  ;;  %v428_v48 = vperm.slane %v613_v45, 0 }
 0x2c4   :  { %v430_v50 = vperm.slane %v615_v46, 0 }
 0x2c5   :  { %v431_v51 = vsel %vm168_vm2, %v428_v48, %v427_v47 }
 0x2c6   :  { %v432_v52 = vsel %vm171_vm3, %v429_v49, %v431_v51 }
 0x2c7   :  { %v433_v54 = vsel %vm174_vm4, %v430_v50, %v432_v52 }
 0x2c8   :  { %v435_v55 = vsel %vm392_vm9, %v433_v54, 0.0 }
 0x2c9   :  { %436 = vadd.xlane.f32.xlu2 %v435_v55  ;;  %v519_v55 = vrot.slane %v586_v43, 2 }
 0x33c   :  { %v437_v58 = vpop.xlane.xlu2 %436 }
 0x33d   :  { %616 = vrcp.f32 %v437_v58  ;;  %v143_v58 = vperm.slane %v795_v33, 0 }
 0x343   :  { %v617_v59 = vpop.eup %616 }
 0x344   :  { %v447_v60 = vperm.slane %v617_v59, %v403_v29  ;;  %v443_v63 = vperm.slane %v617_v59, %v399_v27  ;;  %v520_v59 = vrot.slane %v586_v43, 3 }
 0x346   :  { %v456_v61 = vmul.f32 %v611_v44, %v447_v60  ;;  %v454_v2 = vmul.f32 %v609_v8, %v443_v63  ;;  %v448_v7 = vrot.slane %v443_v63, 1  ;;  %v449_v11 = vrot.slane %v447_v60, 1 }
 0x348   :  { %v475_v62 = vperm.slane %v456_v61, 0  ;;  %v461_v5 = vperm.slane %v454_v2, 0  ;;  %v455_v1 = vmul.f32 %v613_v45, %v448_v7  ;;  %v457_v12 = vmul.f32 %v615_v46, %v449_v11 }
 0x349   :  { %v518_v46 = vrot.slane %v586_v43, 1 }
 0x34a   :  { %480 = vperm.xlu1 %607, %v475_v62   ;;  %v468_v9 = vperm.slane %v455_v1, 0  ;;  %v482_v13 = vperm.slane %v457_v12, 0 }
 0x352   :  { %466 = vperm.xlu1 %607, %v461_v5   ;;  %v201_v5 = vadd.f32 %v200_v19, %v143_v58 }
 0x35a   :  { %473 = vperm.xlu1 %607, %v468_v9  }
 0x362   :  { %487 = vperm.xlu1 %607, %v482_v13  }
 0x3bc   :  { %v481_v17 = vpop.permute.xlu1 %480 }
 0x3bd   :  { %v491_v4 = vmul.f32 %v481_v17, %v113_v53 }
 0x3bf   :  { %v505_v6 = vrot.slane %v491_v4, 4 }
 0x3c1   :  { %v506_v25 = vadd.f32 %v505_v6, %v491_v4 }
 0x3c3   :  { %v507_v31 = vrot.slane %v506_v25, 2 }
 0x3c4   :  { %v467_v3 = vpop.permute.xlu1 %466 }
 0x3c5   :  { %v489_v21 = vmul.f32 %v467_v3, %v108_v20  ;;  %v508_v37 = vadd.f32 %v507_v31, %v506_v25 }
 0x3c7   :  { %v493_v23 = vrot.slane %v489_v21, 4  ;;  %v509_v45 = vrot.slane %v508_v37, 1 }
 0x3c9   :  { %v494_v10 = vadd.f32 %v493_v23, %v489_v21  ;;  %v510_v52 = vadd.f32 %v509_v45, %v508_v37 }
 0x3cb   :  { %v495_v34 = vrot.slane %v494_v10, 2  ;;  %v527_v14 = vmul.f32 %v519_v55, %v510_v52 }
 0x3cc   :  { %v474_v26 = vpop.permute.xlu1 %473 }
 0x3cd   :  { %v490_v27 = vmul.f32 %v474_v26, %v110_v24  ;;  %v496_v39 = vadd.f32 %v495_v34, %v494_v10  ;;  %v535_v2 = vrot.slane %v527_v14, 6 }
 0x3cf   :  { %v499_v29 = vrot.slane %v490_v27, 4  ;;  %v497_v47 = vrot.slane %v496_v39, 1 }
 0x3d1   :  { %v500_v0 = vadd.f32 %v499_v29, %v490_v27  ;;  %v498_v30 = vadd.f32 %v497_v47, %v496_v39 }
 0x3d3   :  { %v501_v36 = vrot.slane %v500_v0, 2  ;;  %v525_v60 = vmul.f32 %v586_v43, %v498_v30 }
 0x3d4   :  { %v488_v38 = vpop.permute.xlu1 %487 }
 0x3d5   :  { %v502_v40 = vadd.f32 %v501_v36, %v500_v0  ;;  %v492_v41 = vmul.f32 %v488_v38, %v115_v35 }
 0x3d7   :  { %v503_v8 = vrot.slane %v502_v40, 1  ;;  %v511_v44 = vrot.slane %v492_v41, 4 }
 0x3d9   :  { %v504_v48 = vadd.f32 %v503_v8, %v502_v40  ;;  %v512_v49 = vadd.f32 %v511_v44, %v492_v41 }
 0x3db   :  { %v526_v50 = vmul.f32 %v518_v46, %v504_v48  ;;  %v513_v51 = vrot.slane %v512_v49, 2 }
 0x3dd   :  { %v514_v54 = vadd.f32 %v513_v51, %v512_v49  ;;  %v533_v56 = vrot.slane %v526_v50, 7 }
 0x3df   :  { %v515_v57 = vrot.slane %v514_v54, 1  ;;  %v534_v63 = vsel %vm168_vm2, %v533_v56, %v525_v60 }
 0x3e0   :  { %v536_v1 = vsel %vm171_vm3, %v535_v2, %v534_v63 }
 0x3e1   :  { %v516_v61 = vadd.f32 %v515_v57, %v514_v54 }
 0x3e3   :  { %v528_v62 = vmul.f32 %v520_v59, %v516_v61 }
 0x3e5   :  { %v537_v7 = vrot.slane %v528_v62, 5 }
 0x3e7   :  { %v538_v9 = vsel %vm174_vm4, %v537_v7, %v536_v1 }
 0x3e8   :  { %v540_v11 = vadd.f32 %v538_v9, %v201_v5 }
 0x3ea   :  { %v542_v33 = vrot.slane %v540_v11, 1  ;;  %v543_v12 = vrot.slane %v540_v11, 2  ;;  %v544_v13 = vrot.slane %v540_v11, 3  ;;  %548 = vst [vmem:[#allocation7] sm:$0x1] %v540_v11 }
 0x3ec   :  { %549 = vst [vmem:[#allocation7 + $0x1] sm:$0x1] %v542_v33 }
 0x3ed   :  { %550 = vst [vmem:[#allocation7 + $0x2] sm:$0x1] %v543_v12 }
 0x3ee   :  { %551 = vst [vmem:[#allocation7 + $0x3] sm:$0x1] %v544_v13 }
 0x3ef   :  { %564 = dma.vmem_to_hbm [thread:$0]  %s557_s29, 64, %s559_s9, [#allocation4], %s706_s10, %s706_s10, %s707_s11  }
 0x3f0   :  { %694 = dma.done.wait [#allocation4], 64  }
 0x3f1   :  { %695 = vsyncadd [#allocation4], 4294967232 }
 0x3f2   :  { %569 = vsyncpa [#allocation3], 1 }
 0x3f3   :  { %570 = vsyncpa [#allocation6], 1 }
 0x3f4   :  { %571 = vsyncpa [#allocation4], 1 }

</bundles_post_ra>
